<compile_context>
chip_gen: v5e
topology: v5e:2x2
jax: 0.10.0
libtpu: 0.0.40
codegen_flags: <defaults>
</compile_context>

<pallas_src>
import functools

import jax
import jax.numpy as jnp
from jax.experimental import pallas as pl
from jax.experimental.pallas import tpu as pltpu


def _round_up(n, m):
    return ((n + m - 1) // m) * m


def _pick_th(hidden, th):
    """Largest multiple of 128 that divides `hidden` and is <= th (fallback: full dim)."""
    if hidden % 128 != 0:
        return hidden                           # full-dim block (layout exception)
    th = min(_round_up(max(th, 128), 128), hidden)
    while hidden % th != 0:
        th -= 128
    return th


def _vmem_bytes(tm, th, d_model, w_bytes, x_bytes, o_bytes, acc_in_out):
    """Rough VMEM footprint: every BlockSpec operand is double-buffered."""
    per_buf = (tm * d_model * x_bytes           # x tile
               + d_model * th * w_bytes         # W1 tile
               + th * 4                         # b1 tile (kept f32)
               + th * d_model * w_bytes         # W2 tile
               + d_model * 4                    # b2
               + tm * d_model * o_bytes)        # output tile
    total = 2 * per_buf
    if not acc_in_out:
        total += tm * d_model * 4               # f32 accumulator scratch
    return total


def _ffn_kernel(x_ref, w1_ref, b1_ref, w2_ref, b2_ref, o_ref, *scratch,
                acc_in_out):
    # acc lives directly in the (f32) output ref when possible; otherwise in a
    # dedicated f32 VMEM scratch (narrow output dtypes).
    acc_ref = o_ref if acc_in_out else scratch[0]
    k = pl.program_id(1)

    @pl.when(k == 0)
    def _init():
        acc_ref[...] = jnp.zeros_like(acc_ref)

    # First matmul restricted to this hidden tile: (tm, D) @ (D, th) -> (tm, th).
    # Operands narrowed to the weight (MXU) dtype in-kernel; accumulate in f32.
    x = x_ref[...]
    f = jnp.dot(x.astype(w1_ref.dtype), w1_ref[...],
                preferred_element_type=jnp.float32)
    f = jnp.maximum(f + b1_ref[...], 0.0)       # bias + ReLU for this tile (f32)
    # TODO(synk): dropout after ReLU is eval-mode identity (no RNG mask applied).

    # Partial second matmul, accumulated over hidden tiles: (tm, th) @ (th, D).
    acc_ref[...] += jnp.dot(f.astype(w2_ref.dtype), w2_ref[...],
                            preferred_element_type=jnp.float32)

    @pl.when(k == pl.num_programs(1) - 1)
    def _finalize():
        # b2 added once per output tile (hoisted out of the hidden loop).
        o_ref[...] = (acc_ref[...] + b2_ref[...]).astype(o_ref.dtype)


def positionwise_feed_forward(x, params, *, tm=512, th=1024,
                              compute_dtype=jnp.bfloat16,
                              prefer_resident_weights=True):
    """y = relu(x @ w1 + b1) @ w2 + b2.

    x: (..., d_model). Weights are pre-transposed to (in, out):
       w1: (d_model, hidden), b1: (1, hidden), w2: (hidden, d_model), b2: (1, d_model).
    """
    *lead, D = x.shape
    Hf = params['w1'].shape[1]

    # Weights in the MXU-native dtype (bf16 by default). Biases stay f32 and are
    # added to the f32 accumulators, so only the matmul operands are narrowed.
    w1 = jnp.asarray(params['w1'], compute_dtype)
    w2 = jnp.asarray(params['w2'], compute_dtype)
    b1 = jnp.asarray(params['b1'], jnp.float32)
    b2 = jnp.asarray(params['b2'], jnp.float32)

    M = 1
    for s in lead:
        M *= s
    xm = x.reshape(M, D)

    out_dtype = x.dtype
    acc_in_out = jnp.dtype(out_dtype) == jnp.dtype(jnp.float32)

    w_bytes = jnp.dtype(compute_dtype).itemsize
    x_bytes = jnp.dtype(x.dtype).itemsize
    o_bytes = jnp.dtype(out_dtype).itemsize

    try:
        vmem_cap = int(pltpu.get_tpu_info().vmem_capacity_bytes)
    except Exception:
        vmem_cap = 64 << 20                     # conservative (v7x per-TC)
    budget = int(0.70 * vmem_cap)

    # --- row tile ---------------------------------------------------------
    m8 = _round_up(M, 8)
    tm = max(8, min(_round_up(tm, 8), m8))
    if m8 > 8 and tm >= m8:
        # Keep >=2 row tiles so the "parallel" axis can shard across both
        # TensorCores on v7x (2 TCs/chip).
        tm = _round_up((m8 + 1) // 2, 8)

    # --- hidden tile --------------------------------------------------------
    if prefer_resident_weights and _vmem_bytes(
            tm, Hf, D, w_bytes, x_bytes, o_bytes, acc_in_out) <= budget:
        # Whole W1/W2 stay resident in VMEM: their block index is constant
        # across the grid, so weights are DMA'd once total instead of once per
        # row tile -> single-pass, MXU-bound kernel (v5e/v6e 128 MiB VMEM).
        th = Hf
    else:
        th = _pick_th(Hf, th)
        while th > 128 and _vmem_bytes(tm, th, D, w_bytes, x_bytes,
                                       o_bytes, acc_in_out) > budget:
            th = _pick_th(Hf, th // 2)
        while tm > 64 and _vmem_bytes(tm, th, D, w_bytes, x_bytes,
                                      o_bytes, acc_in_out) > budget:
            tm = max(64, _round_up(tm // 2, 8))

    Mp = _round_up(M, tm)
    if Mp != M:
        xm = jnp.pad(xm, ((0, Mp - M), (0, 0)))

    K = Hf // th
    grid = (Mp // tm, K)

    # Pre-tile W1 so each (D, th) hidden-column tile is contiguous in HBM
    # (one large DMA descriptor instead of D strided reads). In production this
    # reshape belongs in one-time parameter preparation, not the hot path.
    w1_tiled = w1.reshape(D, K, th).transpose(1, 0, 2)      # (K, D, th)

    est = _vmem_bytes(tm, th, D, w_bytes, x_bytes, o_bytes, acc_in_out)
    vmem_limit = int(min(0.75 * vmem_cap, max(32 << 20, est + (8 << 20))))

    scratch_shapes = [] if acc_in_out else [pltpu.VMEM((tm, D), jnp.float32)]

    out = pl.pallas_call(
        functools.partial(_ffn_kernel, acc_in_out=acc_in_out),
        out_shape=jax.ShapeDtypeStruct((Mp, D), out_dtype),
        grid_spec=pltpu.PrefetchScalarGridSpec(
            num_scalar_prefetch=0,
            grid=grid,
            in_specs=[
                pl.BlockSpec((tm, D), lambda i, k: (i, 0)),            # x rows
                pl.BlockSpec((None, D, th), lambda i, k: (k, 0, 0)),   # W1 tile
                pl.BlockSpec((1, th), lambda i, k: (0, k)),            # b1 tile
                pl.BlockSpec((th, D), lambda i, k: (k, 0)),            # W2 tile
                pl.BlockSpec((1, D), lambda i, k: (0, 0)),             # b2
            ],
            out_specs=pl.BlockSpec((tm, D), lambda i, k: (i, 0)),
            scratch_shapes=scratch_shapes,
        ),
        compiler_params=pltpu.CompilerParams(
            dimension_semantics=("parallel", "arbitrary"),
            vmem_limit_bytes=vmem_limit,
        ),
    )(xm, w1_tiled, b1, w2, b2)

    return out[:M].reshape(*lead, D)


def reference_ffn(x, params):
    """Pure-JAX reference mirroring the PyTorch module (eval mode)."""
    f = jnp.maximum(x @ params['w1'] + params['b1'][0], 0.0)
    return f @ params['w2'] + params['b2'][0]


if __name__ == "__main__":
    # Small but lane-dense shapes (d_model / hidden multiples of 128).
    d_model, ffn_hidden = 128, 256
    B, L = 2, 8

    key = jax.random.PRNGKey(0)
    ks = jax.random.split(key, 5)

    # PyTorch nn.Linear stores weight as (out, in); y = x @ W.T.  Pre-transpose
    # so the kernel does plain x @ W with W of shape (in, out).
    def linear_w(k, out_f, in_f):
        return (0.02 * jax.random.normal(k, (out_f, in_f), jnp.float32)).T

    params = {
        'w1': linear_w(ks[0], ffn_hidden, d_model),
        'b1': 0.01 * jax.random.normal(ks[1], (1, ffn_hidden), jnp.float32),
        'w2': linear_w(ks[2], d_model, ffn_hidden),
        'b2': 0.01 * jax.random.normal(ks[3], (1, d_model), jnp.float32),
    }

    x = jax.random.normal(ks[4], (B, L, d_model), jnp.float32)
    ref = reference_ffn(x, params)

    # 1) Default fast path: bf16 matmuls, resident full weights, >=2 row tiles.
    out_bf16 = positionwise_feed_forward(x, params)
    out_bf16 = jax.block_until_ready(out_bf16)
    assert out_bf16.shape == (B, L, d_model)
    assert jnp.allclose(out_bf16, ref, atol=3e-2, rtol=3e-2), \
        "bf16 kernel mismatch vs reference"

    # 2) f32 path with forced hidden tiling: exercises the k-reduction
    #    accumulation (grid = 2 row tiles x 2 hidden tiles) with a tight tol.
    out_f32 = positionwise_feed_forward(
        x, params, tm=8, th=128, compute_dtype=jnp.float32,
        prefer_resident_weights=False)
    out_f32 = jax.block_until_ready(out_f32)
    assert jnp.allclose(out_f32, ref, atol=1e-4, rtol=1e-4), \
        "f32 kernel mismatch vs reference"

    print("KERNEL_OK")
</pallas_src>

<mosaic_0001>
module attributes {stable_mosaic.version = 11 : i64} {
  func.func @_ffn_kernel(%arg0: i32, %arg1: i32, %arg2: memref<8x128xf32, #tpu.memory_space<vmem>>, %arg3: memref<1x128x256xbf16, #tpu.memory_space<vmem>>, %arg4: memref<1x256xf32, #tpu.memory_space<vmem>>, %arg5: memref<256x128xbf16, #tpu.memory_space<vmem>>, %arg6: memref<1x128xf32, #tpu.memory_space<vmem>>, %arg7: memref<8x128xf32, #tpu.memory_space<vmem>>) attributes {dimension_semantics = [#tpu.dimension_semantics<parallel>, #tpu.dimension_semantics<arbitrary>], iteration_bounds = array<i64: 2, 1>, scalar_prefetch = 0 : i64, scratch_operands = 0 : i64, tpu.core_type = #tpu.core_type<tc>, window_params = [{transform_indices = @transform_0, window_bounds = array<i64: 8, 128>}, {transform_indices = @transform_1, window_bounds = array<i64: 1, 128, 256>}, {transform_indices = @transform_2, window_bounds = array<i64: 1, 256>}, {transform_indices = @transform_3, window_bounds = array<i64: 256, 128>}, {pipeline_mode = #tpu.pipeline_mode<synchronous>, transform_indices = @transform_4, window_bounds = array<i64: 1, 128>}, {transform_indices = @transform_5, window_bounds = array<i64: 8, 128>}]} {
    %c0_i32 = arith.constant 0 : i32
    %0 = arith.cmpi eq, %arg1, %c0_i32 : i32
    %1 = arith.extui %0 : i1 to i32
    %c0_i32_0 = arith.constant 0 : i32
    %2 = arith.cmpi ne, %1, %c0_i32_0 : i32
    scf.if %2 {
      %cst_17 = arith.constant 0.000000e+00 : f32
      %22 = vector.broadcast %cst_17 : f32 to vector<8x128xf32>
      %c0_18 = arith.constant 0 : index
      %c0_19 = arith.constant 0 : index
      %23 = vector.load %arg7[%c0_18, %c0_19] : memref<8x128xf32, #tpu.memory_space<vmem>>, vector<8x128xf32>
      tpu.vector_store %arg7[%c0_18, %c0_19], %22 {strides = array<i32>} : memref<8x128xf32, #tpu.memory_space<vmem>>, vector<8x128xf32>,
    } else {
    }
    %c0 = arith.constant 0 : index
    %c0_1 = arith.constant 0 : index
    %3 = vector.load %arg2[%c0, %c0_1] : memref<8x128xf32, #tpu.memory_space<vmem>>, vector<8x128xf32>
    %4 = arith.truncf %3 : vector<8x128xf32> to vector<8x128xbf16>
    %c0_2 = arith.constant 0 : index
    %c0_3 = arith.constant 0 : index
    %c0_4 = arith.constant 0 : index
    %5 = vector.load %arg3[%c0_2, %c0_3, %c0_4] : memref<1x128x256xbf16, #tpu.memory_space<vmem>>, vector<1x128x256xbf16>
    %6 = vector.shape_cast %5 : vector<1x128x256xbf16> to vector<128x256xbf16>
    %cst = arith.constant dense<0.000000e+00> : vector<8x256xf32>
    %7 = tpu.matmul %4, %6, %cst {dimension_numbers = #tpu.dot_dimension_numbers<[1], [0], [0], [1], [0, 0, 1, 1], [], []>} : vector<8x128xbf16>, vector<128x256xbf16>, vector<8x256xf32> -> vector<8x256xf32>
    %c0_5 = arith.constant 0 : index
    %c0_6 = arith.constant 0 : index
    %8 = vector.load %arg4[%c0_5, %c0_6] : memref<1x256xf32, #tpu.memory_space<vmem>>, vector<1x256xf32>
    %9 = vector.broadcast %8 : vector<1x256xf32> to vector<8x256xf32>
    %10 = arith.addf %7, %9 : vector<8x256xf32>
    %cst_7 = arith.constant 0.000000e+00 : f32
    %11 = vector.broadcast %cst_7 : f32 to vector<8x256xf32>
    %12 = arith.maximumf %10, %11 : vector<8x256xf32>
    %c0_8 = arith.constant 0 : index
    %c0_9 = arith.constant 0 : index
    %13 = vector.load %arg7[%c0_8, %c0_9] : memref<8x128xf32, #tpu.memory_space<vmem>>, vector<8x128xf32>
    %14 = arith.truncf %12 : vector<8x256xf32> to vector<8x256xbf16>
    %c0_10 = arith.constant 0 : index
    %c0_11 = arith.constant 0 : index
    %15 = vector.load %arg5[%c0_10, %c0_11] : memref<256x128xbf16, #tpu.memory_space<vmem>>, vector<256x128xbf16>
    %cst_12 = arith.constant dense<0.000000e+00> : vector<8x128xf32>
    %16 = tpu.matmul %14, %15, %cst_12 {dimension_numbers = #tpu.dot_dimension_numbers<[1], [0], [0], [1], [0, 0, 1, 1], [], []>} : vector<8x256xbf16>, vector<256x128xbf16>, vector<8x128xf32> -> vector<8x128xf32>
    %17 = arith.addf %13, %16 : vector<8x128xf32>
    %c0_13 = arith.constant 0 : index
    %c0_14 = arith.constant 0 : index
    %18 = vector.load %arg7[%c0_13, %c0_14] : memref<8x128xf32, #tpu.memory_space<vmem>>, vector<8x128xf32>
    tpu.vector_store %arg7[%c0_13, %c0_14], %17 {strides = array<i32>} : memref<8x128xf32, #tpu.memory_space<vmem>>, vector<8x128xf32>,
    %c0_i32_15 = arith.constant 0 : i32
    %19 = arith.cmpi eq, %arg1, %c0_i32_15 : i32
    %20 = arith.extui %19 : i1 to i32
    %c0_i32_16 = arith.constant 0 : i32
    %21 = arith.cmpi ne, %20, %c0_i32_16 : i32
    scf.if %21 {
      %c0_17 = arith.constant 0 : index
      %c0_18 = arith.constant 0 : index
      %22 = vector.load %arg7[%c0_17, %c0_18] : memref<8x128xf32, #tpu.memory_space<vmem>>, vector<8x128xf32>
      %c0_19 = arith.constant 0 : index
      %c0_20 = arith.constant 0 : index
      %23 = vector.load %arg6[%c0_19, %c0_20] : memref<1x128xf32, #tpu.memory_space<vmem>>, vector<1x128xf32>
      %24 = vector.broadcast %23 : vector<1x128xf32> to vector<8x128xf32>
      %25 = arith.addf %22, %24 : vector<8x128xf32>
      %c0_21 = arith.constant 0 : index
      %c0_22 = arith.constant 0 : index
      %26 = vector.load %arg7[%c0_21, %c0_22] : memref<8x128xf32, #tpu.memory_space<vmem>>, vector<8x128xf32>
      tpu.vector_store %arg7[%c0_21, %c0_22], %25 {strides = array<i32>} : memref<8x128xf32, #tpu.memory_space<vmem>>, vector<8x128xf32>,
    } else {
    }
    return
  }
  func.func @transform_0(%arg0: i32, %arg1: i32) -> (i32, i32) {
    %c0_i32 = arith.constant 0 : i32
    %c0_i32_0 = arith.constant 0 : i32
    return %arg0, %c0_i32 : i32, i32
  }
  func.func @transform_1(%arg0: i32, %arg1: i32) -> (i32, i32, i32) {
    %c0_i32 = arith.constant 0 : i32
    %c0_i32_0 = arith.constant 0 : i32
    %c0_i32_1 = arith.constant 0 : i32
    return %arg1, %c0_i32, %c0_i32_0 : i32, i32, i32
  }
  func.func @transform_2(%arg0: i32, %arg1: i32) -> (i32, i32) {
    %c0_i32 = arith.constant 0 : i32
    %c0_i32_0 = arith.constant 0 : i32
    return %c0_i32, %arg1 : i32, i32
  }
  func.func @transform_3(%arg0: i32, %arg1: i32) -> (i32, i32) {
    %c0_i32 = arith.constant 0 : i32
    %c0_i32_0 = arith.constant 0 : i32
    return %arg1, %c0_i32 : i32, i32
  }
  func.func @transform_4(%arg0: i32, %arg1: i32) -> (i32, i32) {
    %c0_i32 = arith.constant 0 : i32
    %c0_i32_0 = arith.constant 0 : i32
    %c0_i32_1 = arith.constant 0 : i32
    return %c0_i32, %c0_i32_0 : i32, i32
  }
  func.func @transform_5(%arg0: i32, %arg1: i32) -> (i32, i32) {
    %c0_i32 = arith.constant 0 : i32
    %c0_i32_0 = arith.constant 0 : i32
    return %arg0, %c0_i32 : i32, i32
  }
}

</mosaic_0001>

<bundles_post_ra>
// kernel: tpu_custom_call.1
= control target key start
LH: loop header
LB: loop body
LE: loop exit
PB: predicated region body
PF: predicated region fallthrough
CT: control target
= control target key end

     0   :  { %10 = vsyncpa [#allocation3], 0  ;;  %s1466_s0 = inlined_call_operand.hbm [shape: f32[16,128], index: 0, kind: input, shape index: {}]   ;;  %s1467_s1 = inlined_call_operand.hbm [shape: bf16[1,128,256], index: 1, kind: input, shape index: {}]   ;;  %s1468_s2 = inlined_call_operand.hbm [shape: f32[1,256], index: 2, kind: input, shape index: {}]   ;;  %s1469_s3 = inlined_call_operand.hbm [shape: bf16[256,128], index: 3, kind: input, shape index: {}]   ;;  %s1470_s4 = inlined_call_operand.vmem [shape: f32[1,128], index: 4, kind: input, shape index: {}]   ;;  %s1471_s5 = inlined_call_operand.hbm [shape: f32[16,128], index: 5, kind: output, shape index: {}]  }
   0x1   :  { %12 = vsyncpa [#allocation3 + $0x1], 0 }
   0x2   :  { %13 = vsyncpa [#allocation6], 0 }
   0x3   :  { %14 = vsyncpa [#allocation9], 0 }
   0x4   :  { %15 = vsyncpa [#allocation4], 0 }
   0x5   :  { %17 = vsyncpa [#allocation4 + $0x1], 0  ;;  %s1289_s18 = smov 0   ;;  %s1291_s19 = smov 0  }
   0x6   :  { %s1293_s20 = smov 0   ;;  %s1295_s21 = smov 0  }
   0x7   :  { %s1297_s22 = smov 0   ;;  %s1299_s23 = smov 0  }
   0x8 LB: > { %s762_s24 = sadd.s32 4294967295, %s1250_s23   ;;  %p764_p0 = scmp.ge.s32.totalorder %s1250_s23, 1  ;;  %s1250_s23 = sphi %s1299_s23, %s23_s23   ;;  %s1246_s22 = sphi %s1297_s22, %s1483_s22   ;;  %s1242_s21 = sphi %s1295_s21, %s1482_s21   ;;  %s1238_s20 = sphi %s1293_s20, %s1481_s20   ;;  %s1234_s19 = sphi %s1291_s19, %s1480_s19   ;;  %s1230_s18 = sphi %s1289_s18, %s1479_s18  }
   0x9   : > { %p1323_p1 = scmp.eq.s32.totalorder %s762_s24, 0  ;;  %p191_p2 = scmp.lt.s32.totalorder %s1250_s23, 3 }
   0xa   : > { %s205_s28 = sshll.u32 %s1467_s1, 4  ;;  %s1252_s30 = smov [#allocation5]   ;;  %s206_s28 = int_to_ptr.hbm [resolvable:$true] %s205_s28 }
   0xb   : > { %p1331_p3 = pnand %p764_p0, %p191_p2  ;;  %s207_s6 = sshll.u32 %s1252_s30, 4  ;;  %s208_s6 = int_to_ptr.vmem [resolvable:$true] %s207_s6 }
   0xc   : > { %p768_p6 = scmp.ge.s32.totalorder %s1250_s23, 2  ;;  %s222_s10 = sshll.u32 %s1468_s2, 4  ;;  %s223_s10 = int_to_ptr.hbm [resolvable:$true] %s222_s10 }
   0xd   : > { %p957_p4 = pneg %p1331_p3  ;;  %s1253_s11 = smov 128  }
   0xe   : > { %s1254_s12 = smov 8   ;;  %s1255_s13 = smov [#allocation7]  }
   0xf   : > { %p1339_p5 = pnand %p957_p4, %p1323_p1  ;;  %s224_s14 = sshll.u32 %s1255_s13, 4  ;;  %s225_s14 = int_to_ptr.vmem [resolvable:$true] %s224_s14 }
  0x10   : > { %s236_s17 = sshll.u32 %s1469_s3, 4  ;;  %s1256_s26 = smov [#allocation8]   ;;  %s237_s17 = int_to_ptr.hbm [resolvable:$true] %s236_s17 }
  0x11   : > { %960 = dma.hbm_to_vmem [thread:$0]  (!%p1339_p5), %s206_s28, 2048, %s208_s6, [#allocation6], %s1253_s11, %s1253_s11, %s1254_s12  }
  0x12   : > { %963 = dma.hbm_to_vmem [thread:$0]  (!%p1339_p5), %s223_s10, 32, %s225_s14, [#allocation6]  }
  0x13   : > { %s238_s27 = sshll.u32 %s1256_s26, 4  ;;  %s1257_s28 = smov 64   ;;  %s239_s27 = int_to_ptr.vmem [resolvable:$true] %s238_s27 }
  0x14   : > { %s1258_s30 = smov 4   ;;  %s763_s6 = sadd.s32 4294967294, %s1250_s23  }
  0x15   : > { %966 = dma.hbm_to_vmem [thread:$0]  (!%p1339_p5), %s237_s17, 2048, %s239_s27, [#allocation9], %s1257_s28, %s1257_s28, %s1258_s30  }
  0x16   : > { %s35_s8 = sadd.s32 1, %s1246_s22  ;;  %s42_s9 = sadd.s32 1, %s1238_s20 }
  0x17   : > { %p37_p7 = scmp.ge.s32.totalorder %s35_s8, 2  ;;  %p49_p8 = scmp.ne.s32.totalorder %s1238_s20, %s1234_s19 }
  0x18   : > { %p50_p9 = scmp.eq.s32.totalorder %s1250_s23, 0  ;;  %p55_p10 = scmp.ne.s32.totalorder %s1234_s19, %s1230_s18 }
  0x19   : > { %s1485_s8 = smov (%p37_p7, %s35_s8), 0  ;;  %p178_p13 = scmp.eq.s32.totalorder %s762_s24, 1 }
  0x1a   : > { %p1366_p11 = por %p50_p9, %p49_p8  ;;  %p1372_p12 = por %p1323_p1, %p55_p10 }
  0x1b   : > { %s39_s11 = ssub.s32 %s1246_s22, %s1485_s8  ;;  %p184_p2 = scmp.eq.s32.totalorder %s763_s6, 1 }
  0x1c   : > { %p40_p0 = scmp.eq.s32.totalorder %s39_s11, 0  ;;  %p1380_p4 = por %p178_p13, %p49_p8 }
  0x1d   : > { %p978_p5 = scmp.lt.s32.totalorder %s1250_s23, 2  ;;  %p1388_p7 = por %p184_p2, %p55_p10 }
  0x1e   : > { %s1386_s13 = scalar_select %p40_p0, %s1238_s20, %s42_s9  }
  0x1f   : > { %s255_s15 = sand.u32 1, %s1238_s20   ;;  %s770_s17 = sshll.u32 %s1246_s22, 3 }
  0x20   : > { %s769_s16 = sshll.u32 %s255_s15, 3  ;;  %s263_s24 = scalar_lea.hbm %s1466_s0, %s770_s17 }
  0x21   : > { %s259_s28 = scalar_lea.vmem [#allocation2], %s769_s16  ;;  %s265_s6 = sshll.u32 %s263_s24, 4  ;;  %s266_s6 = int_to_ptr.hbm [resolvable:$true] %s265_s6 }
  0x22   : > { %s267_s30 = sshll.u32 %s259_s28, 4  ;;  %p968_p8 = pnand %p978_p5, %p1366_p11  ;;  %s268_s30 = int_to_ptr.vmem [resolvable:$true] %s267_s30 }
  0x23   : > { %s256_s9 = scalar_lea.sflag [#allocation3], %s255_s15  ;;  %276 = sbr.rel (%p1331_p3) target bundleno = 354 (0x162), region = 40 }
  0x24   : > { %970 = dma.hbm_to_vmem [thread:$0]  (!%p968_p8), %s266_s6, 128, %s268_s30, %s256_s9  }
  0x25   : > { %s1402_s11 = sand.u32 (!%p1331_p3), 1, %s1234_s19  }
  0x26   : > { %s772_s17 = sshll.u32 (!%p1331_p3), %s1402_s11, 3  ;;  %s279_s16 = scalar_lea.sflag (!%p1331_p3), [#allocation3], %s1402_s11 }
  0x27   : > { %s1408_s26 = scalar_lea.vmem (!%p1331_p3), [#allocation2], %s772_s17 }
  0x28   : > { %1213 = dma.done.wait (%p1372_p12), %s279_s16, 128  }
  0x29   : > { %1215 = vsyncadd (%p1372_p12), %s279_s16, 4294967168 }
  0x2a   : > { %1217 = dma.done.wait (%p1323_p1), [#allocation6], 2080  }
  0x2b   : > { %1219 = vsyncadd (%p1323_p1), [#allocation6], 4294965216 }
  0x2c   : > { %1221 = dma.done.wait (%p1323_p1), [#allocation9], 2048  }
  0x2d   : > { %1223 = vsyncadd (%p1323_p1), [#allocation9], 4294965248  ;;  %v835_v0 = vld [vmem:[#allocation5 + $0x70] sm:$0xf]  ;;  %v924_v1 = vld [vmem:[#allocation5 + $0x74] sm:$0xf0] }
  0x2e   : > { %v923_v2 = vld [vmem:[#allocation5 + $0x74] sm:$0xf]  ;;  %v836_v3 = vor.u32 %v924_v1, %v835_v0  ;;  %v837_v4 = vld [vmem:[#allocation5 + $0x78] sm:$0xf0]  ;;  %v827_v5 = vld [vmem:[#allocation5 + $0x60] sm:$0xf] }
  0x2f   : > { %v922_v6 = vld [vmem:[#allocation5 + $0x64] sm:$0xf0]  ;;  %v840_v7 = vor.u32 %v923_v2, %v837_v4  ;;  %v921_v8 = vld [vmem:[#allocation5 + $0x64] sm:$0xf]  ;;  %v829_v9 = vld [vmem:[#allocation5 + $0x68] sm:$0xf0] }
  0x30   : > { %436 = vmatpush.bf16.msra.mxu0 %v836_v3  ;;  %v828_v10 = vor.u32 %v922_v6, %v827_v5  ;;  %v832_v11 = vor.u32 %v921_v8, %v829_v9  ;;  %v819_v12 = vld [vmem:[#allocation5 + $0x50] sm:$0xf]  ;;  %v920_v13 = vld [vmem:[#allocation5 + $0x54] sm:$0xf0]  ;;  %v919_v14 = vld [vmem:[#allocation5 + $0x54] sm:$0xf] }
  0x31   : > { %449 = vmatpush.bf16.msra.mxu1 %v840_v7  ;;  %v821_v15 = vld [vmem:[#allocation5 + $0x58] sm:$0xf0]  ;;  %v820_v16 = vor.u32 %v920_v13, %v819_v12  ;;  %v811_v18 = vld [vmem:[#allocation5 + $0x40] sm:$0xf]  ;;  %v918_v19 = vld [vmem:[#allocation5 + $0x44] sm:$0xf0] }
  0x32   : > { %v824_v17 = vor.u32 %v919_v14, %v821_v15  ;;  %v917_v20 = vld [vmem:[#allocation5 + $0x44] sm:$0xf]  ;;  %v813_v21 = vld [vmem:[#allocation5 + $0x48] sm:$0xf0]  ;;  %v812_v22 = vor.u32 %v918_v19, %v811_v18  ;;  %v932_v23 = vld [vmem:[#allocation8 + $0x38] sm:$0xff]  ;;  %s906_s25 = sshll.u32 %s1242_s21, 3 }
  0x33   : > { %v940_v24 = vld [vmem:[#allocation8 + $0x78] sm:$0xff]  ;;  %v816_v25 = vor.u32 %v917_v20, %v813_v21  ;;  %v803_v26 = vld [vmem:[#allocation5 + $0x30] sm:$0xf]  ;;  %v915_v28 = vld [vmem:[#allocation5 + $0x34] sm:$0xf]  ;;  %595 = vmatpush.bf16.msra.mxu2 %v932_v23  ;;  %s644_s7 = scalar_lea.hbm %s1471_s5, %s906_s25  ;;  %s324_s24 = scalar_lea.vmem [#allocation10], %s772_s17 }
  0x34   : > { %437 = vmatpush.bf16.msra.mxu0 %v828_v10  ;;  %v916_v27 = vld [vmem:[#allocation5 + $0x34] sm:$0xf0]  ;;  %v805_v29 = vld [vmem:[#allocation5 + $0x38] sm:$0xf0]  ;;  %608 = vmatpush.bf16.msra.mxu3 %v940_v24  ;;  %v795_v34 = vld [vmem:[#allocation5 + $0x20] sm:$0xf] }
  0x35   : > { %450 = vmatpush.bf16.msra.mxu1 %v832_v11  ;;  %v931_v30 = vld [vmem:[#allocation8 + $0x30] sm:$0xff]  ;;  %v804_v32 = vor.u32 %v916_v27, %v803_v26  ;;  %v808_v33 = vor.u32 %v915_v28, %v805_v29  ;;  %v914_v35 = vld [vmem:[#allocation5 + $0x24] sm:$0xf0]  ;;  %v913_v36 = vld [vmem:[#allocation5 + $0x24] sm:$0xf]  ;;  %s646_s28 = sshll.u32 %s324_s24, 4  ;;  %s647_s28 = int_to_ptr.vmem [resolvable:$true] %s646_s28 }
  0x36   : > { %v939_v31 = vld [vmem:[#allocation8 + $0x70] sm:$0xff]  ;;  %v797_v37 = vld [vmem:[#allocation5 + $0x28] sm:$0xf0]  ;;  %v796_v40 = vor.u32 %v914_v35, %v795_v34  ;;  %v789_v45 = vld [vmem:[#allocation5 + $0x18] sm:$0xf0]  ;;  %s648_s30 = sshll.u32 %s644_s7, 4  ;;  %s649_s30 = int_to_ptr.hbm [resolvable:$true] %s648_s30 }
  0x37   : > { %596 = vmatpush.bf16.msra.mxu2 %v931_v30  ;;  %v930_v38 = vld [vmem:[#allocation8 + $0x28] sm:$0xff]  ;;  %v800_v41 = vor.u32 %v913_v36, %v797_v37  ;;  %v912_v43 = vld [vmem:[#allocation5 + $0x14] sm:$0xf0]  ;;  %v911_v44 = vld [vmem:[#allocation5 + $0x14] sm:$0xf]  ;;  %s634_s21 = scalar_lea.sflag [#allocation4], %s1402_s11 }
  0x38   : > { %438 = vmatpush.bf16.msra.mxu0 %v820_v16  ;;  %609 = vmatpush.bf16.msra.mxu3 %v939_v31  ;;  %v938_v39 = vld [vmem:[#allocation8 + $0x68] sm:$0xff]  ;;  %v929_v46 = vld [vmem:[#allocation8 + $0x20] sm:$0xff]  ;;  %v792_v49 = vor.u32 %v911_v44, %v789_v45  ;;  %v928_v54 = vld [vmem:[#allocation8 + $0x18] sm:$0xff]  ;;  %s1174_s6 = sshra.s32 %s649_s30, 4  ;;  %s1180_s17 = scalar_lea.hbm %s1471_s5, 16  ;;  %s1175_s6 = int_to_ptr.hbm [resolvable:$true] %s1174_s6 }
  0x39   : > { %451 = vmatpush.bf16.msra.mxu1 %v824_v17  ;;  %v787_v42 = vld [vmem:[#allocation5 + $0x10] sm:$0xf]  ;;  %v937_v47 = vld [vmem:[#allocation8 + $0x60] sm:$0xff]  ;;  %v781_v53 = vld [vmem:[#allocation5 + $0x8] sm:$0xf0]  ;;  %s1176_s9 = scalar_lea.hbm %s1175_s6, 8  ;;  %p1181_p10 = scmp.lt.s32.totalorder %s1175_s6, %s1471_s5 }
  0x3a   : > { %v788_v48 = vor.u32 %v912_v43, %v787_v42  ;;  %v779_v50 = vld [vmem:[#allocation5] sm:$0xf]  ;;  %v910_v51 = vld [vmem:[#allocation5 + $0x4] sm:$0xf0]  ;;  %v909_v52 = vld [vmem:[#allocation5 + $0x4] sm:$0xf]  ;;  %p1177_p1 = scmp.ne.s32.totalorder %s1175_s6, %s1176_s9  ;;  %p1182_p11 = scmp.lt.s32.totalorder %s1180_s17, %s1176_s9 }
  0x3b   : > { %597 = vmatpush.bf16.msra.mxu2 %v930_v38  ;;  %v936_v55 = vld [vmem:[#allocation8 + $0x58] sm:$0xff]  ;;  %v780_v56 = vor.u32 %v910_v51, %v779_v50  ;;  %v784_v58 = vor.u32 %v909_v52, %v781_v53  ;;  %v927_v59 = vld [vmem:[#allocation8 + $0x10] sm:$0xff]  ;;  %v926_v62 = vld [vmem:[#allocation8 + $0x8] sm:$0xff] }
  0x3c   : > { %439 = vmatpush.bf16.msra.mxu0 %v812_v22  ;;  %610 = vmatpush.bf16.msra.mxu3 %v938_v39  ;;  %v332_v57 = vld [vmem:[%s1408_s26] sm:$0xff]  ;;  %v925_v0 = vld [vmem:[#allocation8] sm:$0xff]  ;;  %v350_v2 = vld [vmem:[#allocation7] sm:$0x3]  ;;  %p1178_p3 = pnand %p1177_p1, %p1380_p4  ;;  %p1183_p12 = por %p1182_p11, %p1181_p10 }
  0x3d   : > { %452 = vmatpush.bf16.msra.mxu1 %v816_v25  ;;  %v935_v60 = vld [vmem:[#allocation8 + $0x50] sm:$0xff]  ;;  %v333_v61 = vpack.c.bf16 %v332_v57, %v332_v57  ;;  %v934_v63 = vld [vmem:[#allocation8 + $0x48] sm:$0xff]  ;;  %v933_v1 = vld [vmem:[#allocation8 + $0x40] sm:$0xff]  ;;  %v352_v3 = vperm.slane %v350_v2, 0  ;;  %v353_v4 = vperm.slane %v350_v2, 1 }
  0x3e   : > { %v1039_v18 = vld [vmem:[%s1470_s4] ss:$0 sm:$0xff]  ;;  %p1179_p9 = pneg %p1178_p3 }
  0x3f   : > { %598 = vmatpush.bf16.msra.mxu2 %v929_v46 }
  0x40   : > { %440 = vmatpush.bf16.msra.mxu0 %v804_v32  ;;  %611 = vmatpush.bf16.msra.mxu3 %v937_v47  ;;  %p1184_p13 = pnand %p1183_p12, %p1179_p9 }
  0x41   : > { %453 = vmatpush.bf16.msra.mxu1 %v808_v33 }
  0x43   : > { %599 = vmatpush.bf16.msra.mxu2 %v928_v54 }
  0x44   : > { %441 = vmatpush.bf16.msra.mxu0 %v796_v40  ;;  %612 = vmatpush.bf16.msra.mxu3 %v936_v55 }
  0x45   : > { %454 = vmatpush.bf16.msra.mxu1 %v800_v41 }
  0x47   : > { %600 = vmatpush.bf16.msra.mxu2 %v927_v59 }
  0x48   : > { %442 = vmatpush.bf16.msra.mxu0 %v788_v48  ;;  %613 = vmatpush.bf16.msra.mxu3 %v935_v60 }
  0x49   : > { %455 = vmatpush.bf16.msra.mxu1 %v792_v49 }
  0x4b   : > { %601 = vmatpush.bf16.msra.mxu2 %v926_v62 }
  0x4c   : > { %443 = vmatpush.bf16.msra.mxu0 %v780_v56  ;;  %614 = vmatpush.bf16.msra.mxu3 %v934_v63 }
  0x4d   : > { %456 = vmatpush.bf16.msra.mxu1 %v784_v58 }
  0x4f   : > { %444 = vmatmul.bf16.vlgmr.msra.gmra.mxu0 %v333_v61  ;;  %602 = vmatpush.bf16.msra.mxu2 %v925_v0 }
  0x50   : > { %457 = vmatmul.bf16.vlgmr.msra.gmra.mxu1 %v333_v61  ;;  %615 = vmatpush.bf16.msra.mxu3 %v933_v1 }
  0xcc   : > { %v445_v5 = vpop.f32.mrf.mxu0 }
  0xcd   : > { %v446_v6 = vadd.f32 %v445_v5, %v352_v3  ;;  %v458_v7 = vpop.f32.mrf.mxu1 }
  0xce   : > { %v459_v8 = vadd.f32 %v458_v7, %v353_v4 }
  0xcf   : > { %v462_v9 = vmax.f32 %v446_v6, 0.0 }
  0xd0   : > { %v463_v10 = vmax.f32 %v459_v8, 0.0 }
  0xd1   : > { %v465_v11 = vpack.c.bf16 %v462_v9, %v462_v9 }
  0xd2   : > { %v466_v12 = vpack.c.bf16 %v463_v10, %v463_v10 }
  0xd3   : > { %603 = vmatmul.bf16.vlgmr.msra.gmra.mxu2 %v465_v11 }
  0xd4   : > { %616 = vmatmul.bf16.vlgmr.msra.gmra.mxu3 %v466_v12  ;;  %v447_v13 = vpop.f32.mrf.mxu0 }
  0xd5   : > { %v460_v14 = vpop.f32.mrf.mxu1 }
 0x156   : > { %v604_v15 = vpop.f32.mrf.mxu2 }
 0x157   : > { %v617_v16 = vpop.f32.mrf.mxu3 }
 0x158   : > { %v618_v17 = vadd.f32 %v617_v16, %v604_v15 }
 0x15a   : > { %v631_v19 = vadd.f32 %v1039_v18, %v618_v17 }
 0x15c   : > { %632 = vst [vmem:[%s324_s24] sm:$0xff] %v631_v19 }
 0x15e   : > { %v606_v20 = vpop.f32.mrf.mxu2 }
 0x15f   : > { %v619_v21 = vpop.f32.mrf.mxu3 }
 0x160   : > { %1187 = shalt.err (!%p1184_p13)
}
 0x161   : > { %955 = dma.vmem_to_hbm [thread:$0]  (%p1380_p4), %s647_s28, 128, %s649_s30, %s634_s21  }
 0x162 PF: > { %s660_s11 = sand.u32 1, %s1230_s18   ;;  %p972_p0 = pnand %p768_p6, %p1388_p7 }
 0x163   : > { %s661_s10 = scalar_lea.sflag [#allocation4], %s660_s11 }
 0x164   : > { %p973_p2 = pneg %p972_p0 }
 0x166   : > { %1225 = dma.done.wait (%p973_p2), %s661_s10, 128  }
 0x167   : > { %1227 = vsyncadd (%p973_p2), %s661_s10, 4294967168  ;;  %s23_s23 = sadd.s32 1, %s1250_s23   ;;  %s1479_s18 = smov %s1234_s19 }
 0x168   : > { %p20_p5 = scmp.ge.s32.totalorder %s23_s23, 4   ;;  %s1480_s19 = smov %s1238_s20 }
 0x169   : > { %s1481_s20 = smov %s1386_s13  ;;  %s1482_s21 = smov %s1246_s22 }
 0x16a   : > { %s1483_s22 = smov %s1485_s8  ;;  %22 = sbr.rel (!%p20_p5) target bundleno = 8 (0x8), region = 108 }
 0x16f   :  { %667 = vsyncpa [#allocation3], 1 }
 0x170   :  { %669 = vsyncpa [#allocation3 + $0x1], 1 }
 0x171   :  { %670 = vsyncpa [#allocation6], 1 }
 0x172   :  { %671 = vsyncpa [#allocation9], 1 }
 0x173   :  { %672 = vsyncpa [#allocation4], 1 }
 0x174   :  { %674 = vsyncpa [#allocation4 + $0x1], 1 }

</bundles_post_ra>
